<compile_context>
chip_gen: v6e
topology: v6e:2x2x1
jax: 0.10.0
libtpu: 0.0.40
codegen_flags: <defaults>
</compile_context>

<pallas_src>
import jax
import jax.numpy as jnp
from jax.experimental import pallas as pl
from jax.experimental.pallas import tpu as pltpu


LANE_WIDTH = 512  # lane-dense last dim (multiple of 128) -> unmasked stores

# generation -> (target tile bytes per buffer, vmem_limit_bytes)
_TILE_CONFIG = {
    7: (8 << 20, 48 << 20),   # v7x: 64 MiB physical VMEM, ~3.2 TB/s HBM
    6: (4 << 20, 32 << 20),   # v6e
    5: (4 << 20, 24 << 20),   # v5e: keep 4 MiB tiles, raise scoped limit a bit
    4: (4 << 20, 24 << 20),
}


def _tpu_generation():
    """Best-effort TPU generation from device_kind; default to v6-class."""
    try:
        kind = jax.devices()[0].device_kind.lower()
    except Exception:
        return 6
    for g in (7, 6, 5, 4):
        if f"v{g}" in kind:
            return g
    return 6


def _fuse_parameter_kernel(p_ref, x_ref, o_ref):
    # fc(torch.ones(1)) with in_features=1, out_features=1:
    #   out = W @ ones(1) + b = W[0,0] + b[0]  (scalar, broadcast over x).
    # p_ref is a (2,) SMEM array = [W[0,0], b[0]]. Scalar-ALU work, hidden
    # under the vector add.
    c = p_ref[0] + p_ref[1]
    o_ref[...] = x_ref[...] + c


def _run_pallas(params, x2d, gen):
    """Streaming broadcast-add over a (rows, LANE_WIDTH) f32 slab."""
    rows = x2d.shape[0]
    target_tile_bytes, vmem_limit = _TILE_CONFIG.get(gen, _TILE_CONFIG[6])

    bytes_per_row = LANE_WIDTH * x2d.dtype.itemsize
    tile_r = max(8, (target_tile_bytes // bytes_per_row) // 8 * 8)
    if tile_r >= rows:
        if rows >= 16:
            # Guarantee >= 2 grid steps so a "parallel" axis gives both v7x
            # TensorCores something to stream (harmless on single-TC chips).
            tile_r = pl.cdiv(pl.cdiv(rows, 2), 8) * 8
        else:
            tile_r = rows  # full-extent block is always legal
    grid_r = pl.cdiv(rows, tile_r)  # partial last tile handled by Pallas

    if gen >= 7:
        # Third input buffer is cheap under 64 MiB VMEM and hides DMA issue
        # latency at v7x's short per-step times.
        x_spec = pl.BlockSpec((tile_r, LANE_WIDTH), lambda i: (i, 0),
                              pipeline_mode=pl.Buffered(3))
    else:
        x_spec = pl.BlockSpec((tile_r, LANE_WIDTH), lambda i: (i, 0))

    n_elems = rows * LANE_WIDTH
    return pl.pallas_call(
        _fuse_parameter_kernel,
        out_shape=jax.ShapeDtypeStruct((rows, LANE_WIDTH), x2d.dtype),
        grid=(grid_r,),
        in_specs=[
            pl.BlockSpec(memory_space=pltpu.MemorySpace.SMEM),   # params (2,)
            x_spec,                                              # x tile
        ],
        out_specs=pl.BlockSpec((tile_r, LANE_WIDTH), lambda i: (i, 0)),
        compiler_params=pltpu.CompilerParams(
            dimension_semantics=("parallel",),
            vmem_limit_bytes=vmem_limit),
        cost_estimate=pl.CostEstimate(
            flops=n_elems,
            transcendentals=0,
            bytes_accessed=2 * n_elems * x2d.dtype.itemsize),
    )(params, x2d)


def fuse_parameter_forward(w, b, x):
    """w: (1,1) f32, b: (1,) f32, x: any-shape f32. Returns fc(ones(1)) + x."""
    orig_shape = x.shape
    n = x.size
    gen = _tpu_generation()

    # Pack the two Linear scalars into one tiny 1D SMEM array.
    params = jnp.concatenate(
        [w.reshape(-1).astype(jnp.float32), b.reshape(-1).astype(jnp.float32)])

    flat = x.reshape(-1)
    rows_full = n // LANE_WIDTH
    rem = n - rows_full * LANE_WIDTH

    if rem == 0:
        # Fast path: zero-copy reshape into a lane-dense slab, no pad/slice.
        out2d = _run_pallas(params, flat.reshape(rows_full, LANE_WIDTH), gen)
        return out2d.reshape(orig_shape)

    # Non-512-multiple size: kernel on the aligned prefix, tiny XLA add for
    # the <512-element tail (avoids full-array pad + full-array slice-back).
    pieces = []
    if rows_full > 0:
        prefix = flat[: rows_full * LANE_WIDTH]
        out2d = _run_pallas(params, prefix.reshape(rows_full, LANE_WIDTH), gen)
        pieces.append(out2d.reshape(-1))
    tail = flat[rows_full * LANE_WIDTH:]
    c = params[0] + params[1]
    pieces.append(tail + c)
    return jnp.concatenate(pieces).reshape(orig_shape)


def _reference(w, b, x):
    in_features = w.shape[1]
    return (w @ jnp.ones((in_features,), jnp.float32) + b) + x


if __name__ == "__main__":
    key = jax.random.PRNGKey(0)
    k_w, k_b, k_x = jax.random.split(key, 3)

    in_features, out_features = 1, 1
    # Deterministic synthetic params (shapes match torch.nn.Linear(1, 1)).
    w = jax.random.uniform(k_w, (out_features, in_features),
                           dtype=jnp.float32, minval=-1.0, maxval=1.0)
    b = jax.random.uniform(k_b, (out_features,),
                           dtype=jnp.float32, minval=-1.0, maxval=1.0)

    # Small NCHW input consistent with the module's broadcast-add forward.
    x = jax.random.normal(k_x, (2, 4, 16, 16), dtype=jnp.float32)

    out = fuse_parameter_forward(w, b, x)
    out = jax.block_until_ready(out)
    ref = _reference(w, b, x)
    assert out.shape == x.shape
    assert jnp.allclose(out, ref, atol=1e-6), "mismatch vs reference (main)"

    # Extra self-checks of the different paths:
    #  (a) non-512-multiple size -> exercises the aligned-prefix + tail path
    xa = jax.random.normal(jax.random.PRNGKey(1), (3, 5, 7, 11), jnp.float32)
    oa = jax.block_until_ready(fuse_parameter_forward(w, b, xa))
    assert jnp.allclose(oa, _reference(w, b, xa), atol=1e-6), "mismatch (tail)"
    #  (b) multi-tile grid with a partial last tile (rows=768 -> 2 tiles)
    xb = jax.random.normal(jax.random.PRNGKey(2), (4, 8, 96, 128), jnp.float32)
    ob = jax.block_until_ready(fuse_parameter_forward(w, b, xb))
    assert jnp.allclose(ob, _reference(w, b, xb), atol=1e-6), "mismatch (tiled)"

    print("KERNEL_OK")
</pallas_src>

<mosaic_0001>
module attributes {stable_mosaic.version = 11 : i64} {
  func.func @_fuse_parameter_kernel(%arg0: i32, %arg1: memref<2xf32, #tpu.memory_space<smem>>, %arg2: memref<4x512xf32, #tpu.memory_space<vmem>>, %arg3: memref<4x512xf32, #tpu.memory_space<vmem>>) attributes {dimension_semantics = [#tpu.dimension_semantics<parallel>], iteration_bounds = array<i64: 1>, scalar_prefetch = 0 : i64, scratch_operands = 0 : i64, tpu.core_type = #tpu.core_type<tc>, window_params = [{transform_indices = @transform_0, window_bounds = array<i64: 2>}, {transform_indices = @transform_1, window_bounds = array<i64: 4, 512>}, {transform_indices = @transform_2, window_bounds = array<i64: 4, 512>}]} {
    %c0 = arith.constant 0 : index
    %0 = memref.load %arg1[%c0] : memref<2xf32, #tpu.memory_space<smem>>
    %c1 = arith.constant 1 : index
    %1 = memref.load %arg1[%c1] : memref<2xf32, #tpu.memory_space<smem>>
    %2 = arith.addf %0, %1 : f32
    %c0_0 = arith.constant 0 : index
    %c0_1 = arith.constant 0 : index
    %3 = vector.load %arg2[%c0_0, %c0_1] : memref<4x512xf32, #tpu.memory_space<vmem>>, vector<4x512xf32>
    %4 = vector.broadcast %2 : f32 to vector<4x512xf32>
    %5 = arith.addf %3, %4 : vector<4x512xf32>
    %c0_2 = arith.constant 0 : index
    %c0_3 = arith.constant 0 : index
    %6 = vector.load %arg3[%c0_2, %c0_3] : memref<4x512xf32, #tpu.memory_space<vmem>>, vector<4x512xf32>
    tpu.vector_store %arg3[%c0_2, %c0_3], %5 {strides = array<i32>} : memref<4x512xf32, #tpu.memory_space<vmem>>, vector<4x512xf32>,
    return
  }
  func.func @transform_0(%arg0: i32) -> i32 {
    %c0_i32 = arith.constant 0 : i32
    %c0_i32_0 = arith.constant 0 : i32
    return %c0_i32 : i32
  }
  func.func @transform_1(%arg0: i32) -> (i32, i32) {
    %c0_i32 = arith.constant 0 : i32
    %c0_i32_0 = arith.constant 0 : i32
    return %arg0, %c0_i32 : i32, i32
  }
  func.func @transform_2(%arg0: i32) -> (i32, i32) {
    %c0_i32 = arith.constant 0 : i32
    %c0_i32_0 = arith.constant 0 : i32
    return %arg0, %c0_i32 : i32, i32
  }
}

</mosaic_0001>

<bundles_post_ra>
// kernel: tpu_custom_call.1
= control target key start
LH: loop header
LB: loop body
LE: loop exit
PB: predicated region body
PF: predicated region fallthrough
CT: control target
= control target key end

     0   :  { %7 = vsyncpa [#allocation5], 0  ;;  %s146_s0 = inlined_call_operand.hbm [shape: f32[2], index: 0, kind: input, shape index: {}]   ;;  %s147_s1 = inlined_call_operand.hbm [shape: f32[4,512], index: 1, kind: input, shape index: {}]   ;;  %s148_s2 = inlined_call_operand.hbm [shape: f32[4,512], index: 2, kind: output, shape index: {}]  }
   0x1   :  { %8 = vsyncpa [#allocation3], 0 }
   0x2   :  { %9 = vsyncpa [#allocation4], 0  ;;  %s119_s9 = smov [#allocation2]   ;;  %s120_s12 = smov [#allocation6]  }
   0x3   :  { %17 = dma.hbm_to_smem %s146_s0, 16, %s119_s9, [#allocation5]  }
   0x4   :  { %s24_s13 = sshll.u32 %s120_s12, 4  ;;  %s25_s13 = int_to_ptr.vmem [resolvable:$true] %s24_s13 }
   0x5   :  { %s81_s14 = scalar_lea.vmem %s25_s13, 256  ;;  %p86_p1 = scmp.lt.s32.totalorder %s25_s13, %s25_s13 }
   0x6   :  { %p82_p0 = scmp.ne.s32.totalorder %s25_s13, %s81_s14  ;;  %p87_p2 = scmp.lt.s32.totalorder %s81_s14, %s81_s14 }
   0x8   :  { %p88_p3 = por %p87_p2, %p86_p1 }
   0xa   :  { %p89_p4 = pnand %p88_p3, %p82_p0 }
   0xc   :  { %92 = shalt.err (!%p89_p4)
}
   0xd   :  { %27 = dma.hbm_to_vmem [thread:$0]  %s147_s1, 256, %s25_s13, [#allocation3]  }
   0xe   :  { %113 = dma.done.wait [#allocation5], 16  }
   0xf   :  { %114 = vsyncadd [#allocation5], 4294967280 }
  0x10   :  { %115 = dma.done.wait [#allocation3], 256  }
  0x11   :  { %116 = vsyncadd [#allocation3], 4294967040 }
  0x12   :  { %34 = sfence }
  0x13   :  { %s35_s0 = sld [smem:[#allocation2]]  ;;  %v38_v0 = vld [vmem:[#allocation6] sm:$0xff]  ;;  %v39_v1 = vld [vmem:[#allocation6 + $0x8] sm:$0xff]  ;;  %s121_s19 = smov [#allocation7]  }
  0x14   :  { %s61_s17 = sld [smem:[#allocation2 + $0x1]]  ;;  %s51_s20 = sshll.u32 %s121_s19, 4  ;;  %s52_s20 = int_to_ptr.vmem [resolvable:$true] %s51_s20 }
  0x15   :  { %s93_s21 = scalar_lea.vmem %s52_s20, 256  ;;  %p98_p6 = scmp.lt.s32.totalorder %s52_s20, %s52_s20 }
  0x16   :  { %p94_p5 = scmp.ne.s32.totalorder %s52_s20, %s93_s21  ;;  %p99_p7 = scmp.lt.s32.totalorder %s93_s21, %s93_s21 }
  0x18   :  { %p100_p8 = por %p99_p7, %p98_p6 }
  0x1a   :  { %s37_s18 = sadd.f32 %s61_s17, %s35_s0  ;;  %p101_p9 = pnand %p100_p8, %p94_p5 }
  0x1c   :  { %v40_v2 = vstv %s37_s18 }
  0x1d   :  { %v41_v3 = vadd.f32 %v40_v2, %v38_v0  ;;  %v42_v4 = vadd.f32 %v40_v2, %v39_v1 }
  0x1f   :  { %43 = vst [vmem:[#allocation7] sm:$0xff] %v41_v3  ;;  %44 = vst [vmem:[#allocation7 + $0x8] sm:$0xff] %v42_v4 }
  0x20   :  { %104 = shalt.err (!%p101_p9)
}
  0x21   :  { %54 = dma.vmem_to_hbm [thread:$0]  %s52_s20, 256, %s148_s2, [#allocation4]  }
  0x22   :  { %117 = dma.done.wait [#allocation4], 256  }
  0x23   :  { %118 = vsyncadd [#allocation4], 4294967040 }
  0x24   :  { %58 = vsyncpa [#allocation3], 1 }
  0x25   :  { %59 = vsyncpa [#allocation4], 1 }
  0x26   :  { %60 = vsyncpa [#allocation5], 1 }

</bundles_post_ra>
